<compile_context>
chip_gen: v5e
topology: v5e:2x2
jax: 0.10.0
libtpu: 0.0.40
codegen_flags: <defaults>
</compile_context>

<pallas_src>
import functools
import math

import numpy as np
import jax
import jax.numpy as jnp
from jax import lax
from jax.experimental import pallas as pl
from jax.experimental.pallas import tpu as pltpu

_VMEM_LIMIT = 48 * 1024 * 1024   # <= v7x physical (64 MiB); plenty on v5e/v6e.


def _pick_tile(dim, candidates):
    """Largest candidate that evenly divides `dim`; else the full dim (a block
    equal to the full array extent is always a legal Pallas block).
    NOTE: for large awkward dims this falls back to one huge block — pad inputs
    if that ever exceeds the VMEM budget."""
    for c in candidates:
        if dim % c == 0:
            return c
    return dim


def _attn_seq_tiles():
    """256-wide tiles feed the 2x256^2 MXU on v6e/v7x; v5e (4x128^2) keeps 128."""
    try:
        kind = jax.devices()[0].device_kind.lower()
    except Exception:
        kind = ""
    if "v5 lite" in kind or "v5e" in kind or "v5lite" in kind:
        return (128, 64, 32, 16, 8)
    return (256, 128, 64, 32, 16, 8)


# ---------------------------------------------------------------------------
# Kernel 1: tiled dense linear  out[p] = x @ w[p] + b[p]
# ---------------------------------------------------------------------------
def _linear_kernel(x_ref, w_ref, b_ref, o_ref, acc_ref):
    k = pl.program_id(3)

    @pl.when(k == 0)
    def _init():
        acc_ref[...] = jnp.zeros_like(acc_ref)

    # bf16 MXU inputs (casts are no-ops when already bf16), f32 accumulation.
    acc_ref[...] += jnp.dot(x_ref[...].astype(jnp.bfloat16),
                            w_ref[0].astype(jnp.bfloat16),
                            preferred_element_type=jnp.float32)

    @pl.when(k == pl.num_programs(3) - 1)
    def _finalize():
        o_ref[0] = (acc_ref[...] + b_ref[0]).astype(o_ref.dtype)


def tiled_linear(x2d, w_planes, b_planes, out_dtype):
    """x2d: (M, K); w_planes: (P, K, Np) bf16; b_planes: (P, 1, Np) f32 -> (P, M, Np)."""
    M, K = x2d.shape
    P, K2, Np = w_planes.shape
    assert K2 == K and b_planes.shape == (P, 1, Np)

    tm = _pick_tile(M, (512, 256, 128, 64, 32, 16, 8))
    tn = _pick_tile(Np, (512, 256, 128))
    tk = _pick_tile(K, (1024, 512, 256, 128))
    grid = (P, M // tm, Np // tn, K // tk)

    bytes_accessed = int(
        np.dtype(x2d.dtype).itemsize * P * (Np // tn) * M * K          # x re-reads
        + np.dtype(w_planes.dtype).itemsize * (M // tm) * P * K * Np   # w re-reads
        + np.dtype(b_planes.dtype).itemsize * P * Np
        + np.dtype(out_dtype).itemsize * P * M * Np)
    cost = pl.CostEstimate(flops=2 * P * M * K * Np, transcendentals=0,
                           bytes_accessed=bytes_accessed)

    return pl.pallas_call(
        _linear_kernel,
        out_shape=jax.ShapeDtypeStruct((P, M, Np), out_dtype),
        grid_spec=pltpu.PrefetchScalarGridSpec(
            num_scalar_prefetch=0,
            grid=grid,
            in_specs=[
                pl.BlockSpec((tm, tk), lambda p, i, j, k: (i, k)),
                pl.BlockSpec((1, tk, tn), lambda p, i, j, k: (p, k, j)),
                pl.BlockSpec((1, 1, tn), lambda p, i, j, k: (p, 0, j)),
            ],
            out_specs=pl.BlockSpec((1, tm, tn), lambda p, i, j, k: (p, i, j)),
            scratch_shapes=[pltpu.VMEM((tm, tn), jnp.float32)],
        ),
        compiler_params=pltpu.CompilerParams(
            dimension_semantics=("parallel", "parallel", "parallel", "arbitrary"),
            vmem_limit_bytes=_VMEM_LIMIT,
        ),
        cost_estimate=cost,
    )(x2d, w_planes, b_planes)


# ---------------------------------------------------------------------------
# Kernel 2: flash-style causal attention, all heads per grid step
# ---------------------------------------------------------------------------
def _flash_attn_kernel(q_ref, k_ref, v_ref, o_ref, m_sc, l_sc, acc_sc,
                       *, n_heads, head_dim, tq, tkv):
    qi = pl.program_id(1)
    ki = pl.program_id(2)

    @pl.when(ki == 0)
    def _init():
        m_sc[...] = jnp.full_like(m_sc, -1e30)
        l_sc[...] = jnp.zeros_like(l_sc)
        acc_sc[...] = jnp.zeros_like(acc_sc)

    q_start = qi * tq
    k_start = ki * tkv
    # Fully-causal (interior) block vs. diagonal-intersecting block vs. skip.
    below_diag = k_start + tkv - 1 <= q_start
    on_diag = jnp.logical_and(k_start <= q_start + tq - 1,
                              jnp.logical_not(below_diag))

    def _block(masked):
        if masked:
            row = q_start + lax.broadcasted_iota(jnp.int32, (tq, tkv), 0)
            col = k_start + lax.broadcasted_iota(jnp.int32, (tq, tkv), 1)
            causal = col <= row
        for h in range(n_heads):                       # static unroll
            lo = h * head_dim
            hi = lo + head_dim
            # Ref-sliced per-head loads: only (tq, D) live at a time.
            qh = q_ref[0, 0, :, lo:hi]                 # bf16, scale pre-folded
            kh = k_ref[0, 0, :, lo:hi]
            vh = v_ref[0, 0, :, lo:hi]
            # q @ k^T without an explicit transpose; f32 MXU accumulation.
            s = lax.dot_general(qh, kh, (((1,), (1,)), ((), ())),
                                preferred_element_type=jnp.float32)
            if masked:
                s = jnp.where(causal, s, jnp.float32(-1e30))
            m_prev = m_sc[h]                           # (tq, 1)
            m_new = jnp.maximum(m_prev, jnp.max(s, axis=-1, keepdims=True))
            alpha = jnp.exp(m_prev - m_new)
            p = jnp.exp(s - m_new)                     # (tq, tkv) f32
            l_sc[h] = alpha * l_sc[h] + jnp.sum(p, axis=-1, keepdims=True)
            pv = lax.dot_general(p.astype(vh.dtype), vh, (((1,), (0,)), ((), ())),
                                 preferred_element_type=jnp.float32)
            acc_sc[:, lo:hi] = alpha * acc_sc[:, lo:hi] + pv
            m_sc[h] = m_new

    @pl.when(below_diag)
    def _interior():                                   # no mask VPU work
        _block(masked=False)

    @pl.when(on_diag)
    def _diagonal():                                   # masked path only here
        _block(masked=True)

    @pl.when(ki == pl.num_programs(2) - 1)
    def _finalize():
        for h in range(n_heads):
            lo = h * head_dim
            hi = lo + head_dim
            inv_l = pl.reciprocal(l_sc[h], approx=True)       # EUP slot, ~free
            acc_sc[:, lo:hi] = acc_sc[:, lo:hi] * inv_l
        o_ref[0] = acc_sc[...].astype(o_ref.dtype)            # one lane-dense store


def flash_causal_attention(qkv, n_heads):
    """qkv: (3, B, T, N) packed q/k/v planes (bf16) -> (B, T, N) causal attention."""
    _, B, T, N = qkv.shape
    D = N // n_heads
    cands = _attn_seq_tiles()
    tq = _pick_tile(T, cands)
    tkv = _pick_tile(T, cands)
    grid = (B, T // tq, T // tkv)

    kernel = functools.partial(_flash_attn_kernel, n_heads=n_heads,
                               head_dim=D, tq=tq, tkv=tkv)

    def _clamped(qi, ki):
        # Clamp past the causal diagonal: skipped grid steps map to the block
        # that is already resident, so no K/V DMA is issued for them.
        return jnp.minimum(ki, (qi * tq + tq - 1) // tkv)

    q_spec = pl.BlockSpec((1, 1, tq, N), lambda b, qi, ki: (0, b, qi, 0))
    k_spec = pl.BlockSpec((1, 1, tkv, N), lambda b, qi, ki: (1, b, _clamped(qi, ki), 0))
    v_spec = pl.BlockSpec((1, 1, tkv, N), lambda b, qi, ki: (2, b, _clamped(qi, ki), 0))
    o_spec = pl.BlockSpec((1, tq, N), lambda b, qi, ki: (b, qi, 0))

    itm = np.dtype(qkv.dtype).itemsize
    cost = pl.CostEstimate(
        flops=4 * B * n_heads * T * T * D,
        transcendentals=B * n_heads * T * T,
        bytes_accessed=int(itm * B * T * N * (1 + (T // tq)) + itm * B * T * N),
    )
    return pl.pallas_call(
        kernel,
        out_shape=jax.ShapeDtypeStruct((B, T, N), qkv.dtype),
        grid_spec=pltpu.PrefetchScalarGridSpec(
            num_scalar_prefetch=0,
            grid=grid,
            in_specs=[q_spec, k_spec, v_spec],
            out_specs=o_spec,
            scratch_shapes=[
                pltpu.VMEM((n_heads, tq, 1), jnp.float32),   # running max m
                pltpu.VMEM((n_heads, tq, 1), jnp.float32),   # running sum l
                pltpu.VMEM((tq, N), jnp.float32),            # lane-packed output acc
            ],
        ),
        compiler_params=pltpu.CompilerParams(
            dimension_semantics=("parallel", "parallel", "arbitrary"),
            vmem_limit_bytes=_VMEM_LIMIT,
        ),
        cost_estimate=cost,
    )(qkv, qkv, qkv)


# ---------------------------------------------------------------------------
# One-time parameter preprocessing (hoisted off the forward critical path)
# ---------------------------------------------------------------------------
def prepare_params(params, n_headers):
    N = params["w_proj"].shape[0]
    D = N // n_headers
    # Fold the softmax 1/sqrt(D) scale into the q projection (zero runtime cost).
    plane_scale = jnp.asarray([1.0 / math.sqrt(D), 1.0, 1.0], jnp.float32)
    w_qkv = jnp.swapaxes(params["w_attn"].reshape(3, N, N), 1, 2)   # (3, K, N)
    b_qkv = params["b_attn"].reshape(3, 1, N)
    w_qkv = w_qkv * plane_scale[:, None, None]
    b_qkv = b_qkv * plane_scale[:, None, None]
    return {
        "w_qkv": w_qkv.astype(jnp.bfloat16),     # MXU-native; halves weight DMA
        "b_qkv": b_qkv.astype(jnp.float32),      # bias added in f32
        "w_proj": params["w_proj"].T.reshape(1, N, N).astype(jnp.bfloat16),
        "b_proj": params["b_proj"].reshape(1, 1, N).astype(jnp.float32),
    }


# ---------------------------------------------------------------------------
# Module wrapper (mirrors SimpleSelfAttention.forward with kv_cache=None)
# ---------------------------------------------------------------------------
def simple_self_attention(x, prepped, n_headers):
    B, T, N = x.shape
    M = B * T

    # c_attn: q/k/v written as three (M, N) planes -> the (3, B, T, N) view is a
    # free reshape, so there are NO activation transposes anywhere.  QKV is
    # emitted in bf16 so the attention kernel DMAs half the bytes.
    qkv = tiled_linear(x.reshape(M, N), prepped["w_qkv"], prepped["b_qkv"],
                       out_dtype=jnp.bfloat16).reshape(3, B, T, N)

    # Fused multi-head causal flash attention; output already packed (B, T, H*D).
    y = flash_causal_attention(qkv, n_headers)

    # c_proj (back to the input dtype).
    y = tiled_linear(y.reshape(M, N), prepped["w_proj"], prepped["b_proj"],
                     out_dtype=x.dtype).reshape(B, T, N)

    # TODO(synk): kv_cache / input_pos incremental-decode path (index_copy_)
    # not implemented; matching the no-cache forward, return None for the cache.
    return y, None


# ---------------------------------------------------------------------------
# Pure-JAX reference for verification
# ---------------------------------------------------------------------------
def reference(x, params, n_headers):
    B, T, N = x.shape
    D = N // n_headers
    qkv = x @ params["w_attn"].T + params["b_attn"]
    q, k, v = qkv[..., :N], qkv[..., N: 2 * N], qkv[..., 2 * N:]
    q = q.reshape(B, T, n_headers, D).transpose(0, 2, 1, 3)
    k = k.reshape(B, T, n_headers, D).transpose(0, 2, 1, 3)
    v = v.reshape(B, T, n_headers, D).transpose(0, 2, 1, 3)
    s = jnp.einsum("bhqd,bhkd->bhqk", q, k) / (D ** 0.5)
    mask = jnp.tril(jnp.ones((T, T), dtype=bool))
    s = jnp.where(mask, s, -jnp.inf)
    p = jax.nn.softmax(s, axis=-1)
    y = jnp.einsum("bhqk,bhkd->bhqd", p, v)
    y = y.transpose(0, 2, 1, 3).reshape(B, T, N)
    return y @ params["w_proj"].T + params["b_proj"]


if __name__ == "__main__":
    # Small config: B=2, T=8, n_embd=32, n_headers=4 (head dim 8)
    B, T, N, H = 2, 8, 32, 4

    key = jax.random.PRNGKey(0)
    k_x, k_wa, k_ba, k_wp, k_bp = jax.random.split(key, 5)

    x = jax.random.normal(k_x, (B, T, N), dtype=jnp.float32)
    params = {
        "w_attn": jax.random.normal(k_wa, (3 * N, N), dtype=jnp.float32) * 0.02,
        "b_attn": jax.random.normal(k_ba, (3 * N,), dtype=jnp.float32) * 0.02,
        "w_proj": jax.random.normal(k_wp, (N, N), dtype=jnp.float32) * 0.02,
        "b_proj": jax.random.normal(k_bp, (N,), dtype=jnp.float32) * 0.02,
    }

    prepped = prepare_params(params, H)          # one-time weight relayout
    y, kv_cache = simple_self_attention(x, prepped, H)
    y = jax.block_until_ready(y)

    y_ref = reference(x, params, H)
    assert y.shape == (B, T, N) and y.dtype == jnp.float32
    # bf16 MXU operands + bf16 intermediate activations -> bf16-level tolerance
    # vs. the f32 reference (values are O(0.1), observed error << 1e-2).
    assert jnp.allclose(y, y_ref, atol=2e-2, rtol=2e-2), "mismatch vs reference"

    print("KERNEL_OK")
</pallas_src>

<mosaic_0001>
module attributes {stable_mosaic.version = 11 : i64} {
  func.func @_linear_kernel(%arg0: i32, %arg1: i32, %arg2: i32, %arg3: i32, %arg4: memref<16x32xf32, #tpu.memory_space<vmem>>, %arg5: memref<1x32x32xbf16, #tpu.memory_space<vmem>>, %arg6: memref<1x1x32xf32, #tpu.memory_space<vmem>>, %arg7: memref<1x16x32xbf16, #tpu.memory_space<vmem>>, %arg8: memref<16x32xf32, #tpu.memory_space<vmem>>) attributes {dimension_semantics = [#tpu.dimension_semantics<parallel>, #tpu.dimension_semantics<parallel>, #tpu.dimension_semantics<parallel>, #tpu.dimension_semantics<arbitrary>], iteration_bounds = array<i64: 3, 1, 1, 1>, scalar_prefetch = 0 : i64, scratch_operands = 1 : i64, tpu.core_type = #tpu.core_type<tc>, window_params = [{transform_indices = @transform_0, window_bounds = array<i64: 16, 32>}, {transform_indices = @transform_1, window_bounds = array<i64: 1, 32, 32>}, {transform_indices = @transform_2, window_bounds = array<i64: 1, 1, 32>}, {transform_indices = @transform_3, window_bounds = array<i64: 1, 16, 32>}]} {
    %c0_i32 = arith.constant 0 : i32
    %0 = arith.cmpi eq, %arg3, %c0_i32 : i32
    %1 = arith.extui %0 : i1 to i32
    %c0_i32_0 = arith.constant 0 : i32
    %2 = arith.cmpi ne, %1, %c0_i32_0 : i32
    scf.if %2 {
      %cst_11 = arith.constant 0.000000e+00 : f32
      %14 = vector.broadcast %cst_11 : f32 to vector<16x32xf32>
      %c0_12 = arith.constant 0 : index
      %c0_13 = arith.constant 0 : index
      %15 = vector.load %arg8[%c0_12, %c0_13] : memref<16x32xf32, #tpu.memory_space<vmem>>, vector<16x32xf32>
      tpu.vector_store %arg8[%c0_12, %c0_13], %14 {strides = array<i32>} : memref<16x32xf32, #tpu.memory_space<vmem>>, vector<16x32xf32>,
    } else {
    }
    %c0 = arith.constant 0 : index
    %c0_1 = arith.constant 0 : index
    %3 = vector.load %arg8[%c0, %c0_1] : memref<16x32xf32, #tpu.memory_space<vmem>>, vector<16x32xf32>
    %c0_2 = arith.constant 0 : index
    %c0_3 = arith.constant 0 : index
    %4 = vector.load %arg4[%c0_2, %c0_3] : memref<16x32xf32, #tpu.memory_space<vmem>>, vector<16x32xf32>
    %5 = arith.truncf %4 : vector<16x32xf32> to vector<16x32xbf16>
    %c0_4 = arith.constant 0 : index
    %c0_5 = arith.constant 0 : index
    %c0_6 = arith.constant 0 : index
    %6 = vector.load %arg5[%c0_4, %c0_5, %c0_6] : memref<1x32x32xbf16, #tpu.memory_space<vmem>>, vector<1x32x32xbf16>
    %7 = vector.shape_cast %6 : vector<1x32x32xbf16> to vector<32x32xbf16>
    %cst = arith.constant dense<0.000000e+00> : vector<16x32xf32>
    %8 = tpu.matmul %5, %7, %cst {dimension_numbers = #tpu.dot_dimension_numbers<[1], [0], [0], [1], [0, 0, 1, 1], [], []>} : vector<16x32xbf16>, vector<32x32xbf16>, vector<16x32xf32> -> vector<16x32xf32>
    %9 = arith.addf %3, %8 : vector<16x32xf32>
    %c0_7 = arith.constant 0 : index
    %c0_8 = arith.constant 0 : index
    %10 = vector.load %arg8[%c0_7, %c0_8] : memref<16x32xf32, #tpu.memory_space<vmem>>, vector<16x32xf32>
    tpu.vector_store %arg8[%c0_7, %c0_8], %9 {strides = array<i32>} : memref<16x32xf32, #tpu.memory_space<vmem>>, vector<16x32xf32>,
    %c0_i32_9 = arith.constant 0 : i32
    %11 = arith.cmpi eq, %arg3, %c0_i32_9 : i32
    %12 = arith.extui %11 : i1 to i32
    %c0_i32_10 = arith.constant 0 : i32
    %13 = arith.cmpi ne, %12, %c0_i32_10 : i32
    scf.if %13 {
      %c0_11 = arith.constant 0 : index
      %c0_12 = arith.constant 0 : index
      %14 = vector.load %arg8[%c0_11, %c0_12] : memref<16x32xf32, #tpu.memory_space<vmem>>, vector<16x32xf32>
      %c0_13 = arith.constant 0 : index
      %c0_14 = arith.constant 0 : index
      %c0_15 = arith.constant 0 : index
      %15 = vector.load %arg6[%c0_13, %c0_14, %c0_15] : memref<1x1x32xf32, #tpu.memory_space<vmem>>, vector<1x1x32xf32>
      %16 = vector.shape_cast %15 : vector<1x1x32xf32> to vector<1x32xf32>
      %17 = vector.broadcast %16 : vector<1x32xf32> to vector<16x32xf32>
      %18 = arith.addf %14, %17 : vector<16x32xf32>
      %19 = arith.truncf %18 : vector<16x32xf32> to vector<16x32xbf16>
      %c0_16 = arith.constant 0 : index
      %c0_17 = arith.constant 0 : index
      %c0_18 = arith.constant 0 : index
      %20 = vector.load %arg7[%c0_16, %c0_17, %c0_18] : memref<1x16x32xbf16, #tpu.memory_space<vmem>>, vector<1x16x32xbf16>
      %21 = vector.shape_cast %20 : vector<1x16x32xbf16> to vector<16x32xbf16>
      %22 = vector.shape_cast %19 : vector<16x32xbf16> to vector<1x16x32xbf16>
      tpu.vector_store %arg7[%c0_16, %c0_17, %c0_18], %22 {strides = array<i32>} : memref<1x16x32xbf16, #tpu.memory_space<vmem>>, vector<1x16x32xbf16>,
    } else {
    }
    return
  }
  func.func @transform_0(%arg0: i32, %arg1: i32, %arg2: i32, %arg3: i32) -> (i32, i32) {
    %c0_i32 = arith.constant 0 : i32
    return %arg1, %arg3 : i32, i32
  }
  func.func @transform_1(%arg0: i32, %arg1: i32, %arg2: i32, %arg3: i32) -> (i32, i32, i32) {
    %c0_i32 = arith.constant 0 : i32
    return %arg0, %arg3, %arg2 : i32, i32, i32
  }
  func.func @transform_2(%arg0: i32, %arg1: i32, %arg2: i32, %arg3: i32) -> (i32, i32, i32) {
    %c0_i32 = arith.constant 0 : i32
    %c0_i32_0 = arith.constant 0 : i32
    return %arg0, %c0_i32, %arg2 : i32, i32, i32
  }
  func.func @transform_3(%arg0: i32, %arg1: i32, %arg2: i32, %arg3: i32) -> (i32, i32, i32) {
    %c0_i32 = arith.constant 0 : i32
    return %arg0, %arg1, %arg2 : i32, i32, i32
  }
}

</mosaic_0001>

<bundles_post_ra>
// kernel: tpu_custom_call.1
= control target key start
LH: loop header
LB: loop body
LE: loop exit
PB: predicated region body
PF: predicated region fallthrough
CT: control target
= control target key end

     0   :  { %8 = vsyncpa [#allocation4], 0  ;;  %s1007_s0 = inlined_call_operand.hbm [shape: f32[16,32], index: 0, kind: input, shape index: {}]   ;;  %s1008_s1 = inlined_call_operand.hbm [shape: bf16[3,32,32], index: 1, kind: input, shape index: {}]   ;;  %s1009_s2 = inlined_call_operand.hbm [shape: f32[3,1,32], index: 2, kind: input, shape index: {}]   ;;  %s1010_s3 = inlined_call_operand.hbm [shape: bf16[3,16,32], index: 3, kind: output, shape index: {}]  }
   0x1   :  { %9 = vsyncpa [#allocation7], 0 }
   0x2   :  { %11 = vsyncpa [#allocation7 + $0x1], 0 }
   0x3   :  { %12 = vsyncpa [#allocation5], 0 }
   0x4   :  { %14 = vsyncpa [#allocation5 + $0x1], 0  ;;  %s830_s12 = smov 0   ;;  %s832_s13 = smov 0  }
   0x5   :  { %s834_s14 = smov 0   ;;  %s836_s15 = smov 0  }
   0x6   :  { %s838_s16 = smov 0   ;;  %s840_s17 = smov 0  }
   0x7 LB: > { %s46_s18 = sadd.s32 1, %s796_s16  ;;  %s85_s19 = sadd.s32 1, %s788_s14  ;;  %s800_s17 = sphi %s840_s17, %s20_s17   ;;  %s796_s16 = sphi %s838_s16, %s1021_s16   ;;  %s792_s15 = sphi %s836_s15, %s1020_s15   ;;  %s788_s14 = sphi %s834_s14, %s1019_s14   ;;  %s784_s13 = sphi %s832_s13, %s1018_s13   ;;  %s780_s12 = sphi %s830_s12, %s1017_s12  }
   0x8   : > { %p48_p0 = scmp.ge.s32.totalorder %s46_s18, 3  ;;  %p92_p1 = scmp.ne.s32.totalorder %s788_s14, %s784_s13 }
   0x9   : > { %p93_p2 = scmp.eq.s32.totalorder %s800_s17, 0  ;;  %p564_p4 = scmp.lt.s32.totalorder %s800_s17, 3 }
   0xa   : > { %s1023_s18 = smov (%p48_p0, %s46_s18), 0  ;;  %s198_s22 = sand.u32 1, %s800_s17  }
   0xb   : > { %p870_p3 = por %p93_p2, %p92_p1  ;;  %s78_s21 = ssub.s32 %s796_s16, %s1023_s18 }
   0xc   : > { %p83_p5 = scmp.eq.s32.totalorder %s78_s21, 0  ;;  %s200_s23 = sand.u32 1, %s788_s14  }
   0xd   : > { %s534_s24 = sshll.u32 %s796_s16, 4  ;;  %s513_s26 = sshll.u32 %s200_s23, 4 }
   0xe   : > { %s881_s25 = scalar_select %p83_p5, %s788_s14, %s85_s19  }
   0xf   : > { %s210_s29 = scalar_lea.hbm %s1008_s1, %s534_s24  ;;  %s202_s4 = scalar_lea.vmem [#allocation6], %s513_s26 }
  0x10   : > { %s211_s30 = sshll.u32 %s210_s29, 4  ;;  %s213_s5 = sshll.u32 %s202_s4, 4  ;;  %s212_s30 = int_to_ptr.hbm [resolvable:$true] %s211_s30  ;;  %s214_s5 = int_to_ptr.vmem [resolvable:$true] %s213_s5 }
  0x11   : > { %p892_p6 = pnand %p564_p4, %p870_p3  ;;  %s896_s7 = scalar_lea.sflag [#allocation7], %s198_s22 }
  0x12   : > { %s802_s8 = smov 64   ;;  %s803_s9 = smov 4  }
  0x13   : > { %555 = dma.hbm_to_vmem [thread:$0]  (!%p892_p6), %s212_s30, 256, %s214_s5, %s896_s7, %s802_s8, %s802_s8, %s803_s9  }
  0x14   : > { %s902_s10 = sadd.s32 4294967295, %s800_s17   ;;  %s509_s11 = sadd.s32 4294967294, %s800_s17  }
  0x15   : > { %p98_p7 = scmp.ne.s32.totalorder %s784_s13, %s780_s12  ;;  %p99_p8 = scmp.eq.s32.totalorder %s902_s10, 0 }
  0x16   : > { %p154_p9 = scmp.eq.s32.totalorder %s902_s10, 2  ;;  %p160_p10 = scmp.eq.s32.totalorder %s509_s11, 2 }
  0x17   : > { %p510_p11 = scmp.ge.s32.totalorder %s800_s17, 1  ;;  %p912_p12 = por %p99_p8, %p98_p7 }
  0x18   : > { %p919_p13 = por %p154_p9, %p92_p1  ;;  %p923_p0 = por %p160_p10, %p98_p7 }
  0x19   : > { %p167_p2 = scmp.lt.s32.totalorder %s800_s17, 4  ;;  %s182_s26 = sshll.u32 %s1007_s0, 4  ;;  %s183_s26 = int_to_ptr.hbm [resolvable:$true] %s182_s26 }
  0x1a   : > { %s804_s28 = smov [#allocation3]   ;;  %s230_s5 = scalar_lea.hbm %s1009_s2, %s796_s16 }
  0x1b   : > { %p931_p3 = pnand %p510_p11, %p167_p2  ;;  %s184_s29 = sshll.u32 %s804_s28, 4  ;;  %s185_s29 = int_to_ptr.vmem [resolvable:$true] %s184_s29 }
  0x1c   : > { %s226_s8 = scalar_lea.vmem [#allocation8], %s200_s23  ;;  %s232_s11 = sshll.u32 %s230_s5, 4  ;;  %s233_s11 = int_to_ptr.hbm [resolvable:$true] %s232_s11 }
  0x1d   : > { %p548_p1 = pneg %p931_p3  ;;  %s234_s9 = sshll.u32 %s226_s8, 4  ;;  %s235_s9 = int_to_ptr.vmem [resolvable:$true] %s234_s9 }
  0x1e   : > { %s805_s22 = smov 128   ;;  %s806_s24 = smov 8  }
  0x1f   : > { %p549_p4 = pnand %p548_p1, %p99_p8  ;;  %243 = sbr.rel (%p931_p3) target bundleno = 201 (0xc9), region = 32 }
  0x20   : > { %558 = dma.hbm_to_vmem [thread:$0]  (!%p892_p6), %s233_s11, 16, %s235_s9, %s896_s7  }
  0x21   : > { %551 = dma.hbm_to_vmem [thread:$0]  (!%p549_p4), %s183_s26, 256, %s185_s29, [#allocation4], %s805_s22, %s805_s22, %s806_s24  }
  0x24   : > { %767 = dma.done.wait (%p99_p8), [#allocation4], 256  }
  0x25   : > { %769 = vsyncadd (%p99_p8), [#allocation4], 4294967040  ;;  %s250_s23 = sand.u32 1, %s902_s10   ;;  %s956_s28 = sand.u32 1, %s784_s13  }
  0x26   : > { %s518_s26 = sshll.u32 %s956_s28, 4  ;;  %s251_s29 = scalar_lea.sflag [#allocation7], %s250_s23 }
  0x27   : > { %s254_s6 = scalar_lea.vmem [#allocation6], %s518_s26 }
  0x28   : > { %771 = dma.done.wait (%p912_p12), %s251_s29, 272  }
  0x29   : > { %773 = vsyncadd (%p912_p12), %s251_s29, 4294967024  ;;  %vm299_vm0 = vcmask 261120   ;;  %v807_v0 = vmov 0.0   ;;  %v536_v1 = vld [vmem:[%s254_s6 + $0x8] sm:$0xff]  ;;  %v535_v2 = vld [vmem:[%s254_s6] sm:$0xff]  ;;  %s263_s7 = scalar_lea.vmem [#allocation8], %s956_s28 }
  0x2a   : > { %300 = vst.msk [vmem:[#allocation2] sm:$0xff] %vm299_vm0, %v807_v0  ;;  %333 = vmatpush.bf16.msra.mxu0 %v536_v1  ;;  %v304_v3 = vld [vmem:[#allocation3] sm:$0xff]  ;;  %v305_v4 = vld [vmem:[#allocation3 + $0x8] sm:$0xff]  ;;  %v623_v10 = vld [vmem:[%s263_s7] ss:$0 sm:$0xff]  ;;  %s519_s10 = sshll.u32 %s956_s28, 3 }
  0x2b   : > { %301 = vst.msk [vmem:[#allocation2 + $0x8] sm:$0xff] %vm299_vm0, %v807_v0  ;;  %v306_v5 = vpack.c.bf16 %v305_v4, %v304_v3  ;;  %s537_s19 = sshll.u32 %s792_s15, 3  ;;  %vm358_vm1 = vcmask 257024   ;;  %s290_s5 = scalar_lea.vmem [#allocation9], %s519_s10 }
  0x2c   : > { %s376_s4 = scalar_lea.hbm %s1010_s3, %s537_s19  ;;  %s377_s8 = sshll.u32 %s290_s5, 4  ;;  %s378_s8 = int_to_ptr.vmem [resolvable:$true] %s377_s8 }
  0x2d   : > { %s379_s9 = sshll.u32 %s376_s4, 4  ;;  %s362_s11 = scalar_lea.sflag [#allocation5], %s956_s28  ;;  %s380_s9 = int_to_ptr.hbm [resolvable:$true] %s379_s9 }
  0x2e   : > { %334 = vmatpush.bf16.msra.mxu0 %v535_v2  ;;  %s728_s22 = sshra.s32 %s380_s9, 4  ;;  %s734_s26 = scalar_lea.hbm %s1010_s3, 24  ;;  %s729_s22 = int_to_ptr.hbm [resolvable:$true] %s728_s22 }
  0x2f   : > { %s730_s15 = scalar_lea.hbm %s729_s22, 8  ;;  %p735_p8 = scmp.lt.s32.totalorder %s729_s22, %s1010_s3 }
  0x30   : > { %p731_p5 = scmp.ne.s32.totalorder %s729_s22, %s730_s15  ;;  %p736_p9 = scmp.lt.s32.totalorder %s734_s26, %s730_s15 }
  0x31   : > { %528 = vmatmul.msk.bf16.vlgmr.msra.gmra.mxu0 %vm299_vm0, %v306_v5  ;;  %v302_v6 = vld [vmem:[#allocation2] sm:$0xff] }
  0x32   : > { %v303_v9 = vld [vmem:[#allocation2 + $0x8] sm:$0xff]  ;;  %p732_p6 = pnand %p731_p5, %p919_p13  ;;  %p737_p10 = por %p736_p9, %p735_p8 }
  0x34   : > { %p733_p7 = pneg %p732_p6 }
  0x36   : > { %p738_p11 = pnand %p737_p10, %p733_p7 }
  0xae   : > { %v336_v7 = vpop.f32.mrf.mxu0 }
  0xaf   : > { %v341_v8 = vadd.f32 %v336_v7, %v302_v6 }
  0xb1   : > { %343 = vst.msk [vmem:[#allocation2] sm:$0xff] %vm299_vm0, %v341_v8 }
  0xb6   : > { %v338_v11 = vpop.f32.mrf.mxu0 }
  0xb7   : > { %v342_v12 = vadd.f32 %v338_v11, %v303_v9 }
  0xb8   : > { %v348_v13 = vld [vmem:[#allocation2] sm:$0xff] }
  0xb9   : > { %344 = vst.msk [vmem:[#allocation2 + $0x8] sm:$0xff] %vm299_vm0, %v342_v12  ;;  %v354_v14 = vadd.f32 %v623_v10, %v348_v13 }
  0xbb   : > { %v356_v15 = vpack.c.bf16 %v354_v14, %v354_v14 }
  0xbd   : > { %359 = vst.msk [vmem:[%s290_s5] sm:$0xf] %vm358_vm1, %v356_v15 }
  0xc0   : > { %v349_v16 = vld [vmem:[#allocation2 + $0x8] sm:$0xff] }
  0xc1   : > { %v355_v17 = vadd.f32 %v623_v10, %v349_v16 }
  0xc3   : > { %v357_v18 = vpack.c.bf16 %v355_v17, %v355_v17 }
  0xc5   : > { %360 = vst.msk [vmem:[%s290_s5 + $0x4] sm:$0xf] %vm358_vm1, %v357_v18 }
  0xc6   : > { %741 = shalt.err (!%p738_p11)
}
  0xc7   : > { %s808_s28 = smov 64   ;;  %s809_s7 = smov 4  }
  0xc8   : > { %546 = dma.vmem_to_hbm [thread:$0]  (%p919_p13), %s378_s8, 128, %s380_s9, %s362_s11, %s808_s28, %s808_s28, %s809_s7  }
  0xc9 PF: > { %p566_p12 = scmp.ge.s32.totalorder %s800_s17, 2  ;;  %s394_s10 = sand.u32 1, %s780_s12  }
  0xca   : > { %s395_s19 = scalar_lea.sflag [#allocation5], %s394_s10 }
  0xcb   : > { %p560_p2 = pnand %p566_p12, %p923_p0 }
  0xcd   : > { %p561_p3 = pneg %p560_p2 }
  0xcf   : > { %775 = dma.done.wait (%p561_p3), %s395_s19, 128  }
  0xd0   : > { %777 = vsyncadd (%p561_p3), %s395_s19, 4294967168  ;;  %s20_s17 = sadd.s32 1, %s800_s17   ;;  %s1017_s12 = smov %s784_s13 }
  0xd1   : > { %p17_p1 = scmp.ge.s32.totalorder %s20_s17, 5   ;;  %s1018_s13 = smov %s788_s14 }
  0xd2   : > { %s1019_s14 = smov %s881_s25  ;;  %s1020_s15 = smov %s796_s16 }
  0xd3   : > { %s1021_s16 = smov %s1023_s18  ;;  %19 = sbr.rel (!%p17_p1) target bundleno = 7 (0x7), region = 102 }
  0xd8   :  { %401 = vsyncpa [#allocation4], 1 }
  0xd9   :  { %403 = vsyncpa [#allocation4 + $0x1], 1 }
  0xda   :  { %404 = vsyncpa [#allocation7], 1 }
  0xdb   :  { %406 = vsyncpa [#allocation7 + $0x1], 1 }
  0xdc   :  { %407 = vsyncpa [#allocation5], 1 }
  0xdd   :  { %409 = vsyncpa [#allocation5 + $0x1], 1 }

</bundles_post_ra>
